<compile_context>
chip_gen: v7x
topology: tpu7x:2x2x1
jax: 0.10.0
libtpu: 0.0.40
codegen_flags: <defaults>
</compile_context>

<pallas_src>
import functools
import math

import jax
import jax.numpy as jnp
from jax.experimental import pallas as pl
from jax.experimental.pallas import tpu as pltpu

_TWO_PI = 2.0 * math.pi


def _sinusoidal_kernel(x_ref, o_ref, *, d):
    # x_ref: (tile_b, D); o_ref: (tile_b, 2*D)
    # Upcast to f32 for the transcendentals (v5e has no bf16 VPU/EUP path).
    x = x_ref[...].astype(jnp.float32) * _TWO_PI
    # TODO(synk): if a v7x bundle dump shows this kernel VALU-bound, share the
    # sin/cos range reduction (reduce once, evaluate both polynomials) instead
    # of two independent jnp.sin/jnp.cos expansions.
    o_ref[:, :d] = jnp.sin(x).astype(o_ref.dtype)
    o_ref[:, d:] = jnp.cos(x).astype(o_ref.dtype)


def sinusoidal_embedding(x, *, tile_b=None):
    """Pallas TPU implementation of SinusoidalEmbedding.forward.

    x: [B, D] float array -> [B, 2*D] = concat([sin(2*pi*x), cos(2*pi*x)], -1).
    """
    B, D = x.shape
    dtype = x.dtype
    itemsize = jnp.dtype(dtype).itemsize

    # Sublane packing: 8 rows for 4-byte dtypes, 16 for 2-byte, 32 for 1-byte.
    sublane = max(8, 32 // itemsize)

    if tile_b is None:
        # Per grid step: 2 buffers * (in tile: D + out tile: 2*D)
        #   = 6 * tile_b * D * itemsize.  Keep it ~<= 8 MiB (safe under the
        # smallest default scoped-VMEM budgets on all generations).
        vmem_budget = 8 * 1024 * 1024
        tile_b = vmem_budget // (6 * max(D, 1) * itemsize)
        tile_b = max(sublane, min(tile_b, 4096))

    # Guarantee >= 2 grid steps when the batch is big enough so the "parallel"
    # axis can shard across both v7x TensorCores (no-op on single-TC chips).
    if B > 2 * sublane:
        half_b = max(sublane, (pl.cdiv(B, 2) // sublane) * sublane)
        tile_b = min(tile_b, half_b)

    if tile_b >= B:
        tile_b = B  # single block covering the whole (possibly ragged) batch
    else:
        tile_b = max(sublane, (tile_b // sublane) * sublane)

    grid = (pl.cdiv(B, tile_b),)

    cost = pl.CostEstimate(
        flops=B * D,                           # the 2*pi scale
        transcendentals=2 * B * D,             # sin + cos per element
        bytes_accessed=3 * B * D * itemsize,   # read D, write 2*D per row
    )

    kernel = functools.partial(_sinusoidal_kernel, d=D)

    out = pl.pallas_call(
        kernel,
        out_shape=jax.ShapeDtypeStruct((B, 2 * D), dtype),
        grid_spec=pltpu.PrefetchScalarGridSpec(
            num_scalar_prefetch=0,
            grid=grid,
            # Last block dims equal the full array dims -> exempt from the
            # 128-lane divisibility rule; ragged D is masked in-kernel.
            in_specs=[pl.BlockSpec((tile_b, D), lambda i: (i, 0))],
            out_specs=pl.BlockSpec((tile_b, 2 * D), lambda i: (i, 0)),
        ),
        compiler_params=pltpu.CompilerParams(
            dimension_semantics=("parallel",),
            vmem_limit_bytes=32 * 1024 * 1024,
        ),
        cost_estimate=cost,
    )(x)

    return out


if __name__ == "__main__":
    key = jax.random.PRNGKey(0)
    B, D = 8, 32  # small shapes; D deliberately NOT 128-aligned (masked lanes)
    x = jax.random.uniform(key, (B, D), dtype=jnp.float32)

    out = sinusoidal_embedding(x)
    out = jax.block_until_ready(out)

    # Pure-JAX reference for correctness check.
    xr = 2.0 * math.pi * x
    ref = jnp.concatenate([jnp.sin(xr), jnp.cos(xr)], axis=-1)
    assert out.shape == (B, 2 * D)
    assert jnp.allclose(out, ref, atol=1e-5, rtol=1e-5)

    print("KERNEL_OK")
</pallas_src>

<mosaic_0001>
module attributes {stable_mosaic.version = 11 : i64} {
  func.func @_sinusoidal_kernel(%arg0: i32, %arg1: memref<8x32xf32, #tpu.memory_space<vmem>>, %arg2: memref<8x64xf32, #tpu.memory_space<vmem>>) attributes {dimension_semantics = [#tpu.dimension_semantics<parallel>], iteration_bounds = array<i64: 1>, scalar_prefetch = 0 : i64, scratch_operands = 0 : i64, tpu.core_type = #tpu.core_type<tc>, window_params = [{transform_indices = @transform_0, window_bounds = array<i64: 8, 32>}, {transform_indices = @transform_1, window_bounds = array<i64: 8, 64>}]} {
    %c0 = arith.constant 0 : index
    %c0_0 = arith.constant 0 : index
    %0 = vector.load %arg1[%c0, %c0_0] : memref<8x32xf32, #tpu.memory_space<vmem>>, vector<8x32xf32>
    %cst = arith.constant 6.28318548 : f32
    %1 = vector.broadcast %cst : f32 to vector<8x32xf32>
    %2 = arith.mulf %0, %1 : vector<8x32xf32>
    %3 = math.sin %2 : vector<8x32xf32>
    %c0_1 = arith.constant 0 : index
    %c0_2 = arith.constant 0 : index
    %4 = vector.load %arg2[%c0_1, %c0_2] : memref<8x64xf32, #tpu.memory_space<vmem>>, vector<8x32xf32>
    tpu.vector_store %arg2[%c0_1, %c0_2], %3 {strides = array<i32>} : memref<8x64xf32, #tpu.memory_space<vmem>>, vector<8x32xf32>,
    %5 = math.cos %2 : vector<8x32xf32>
    %c0_3 = arith.constant 0 : index
    %c32 = arith.constant 32 : index
    %6 = vector.load %arg2[%c0_3, %c32] : memref<8x64xf32, #tpu.memory_space<vmem>>, vector<8x32xf32>
    tpu.vector_store %arg2[%c0_3, %c32], %5 {strides = array<i32>} : memref<8x64xf32, #tpu.memory_space<vmem>>, vector<8x32xf32>,
    return
  }
  func.func @transform_0(%arg0: i32) -> (i32, i32) {
    %c0_i32 = arith.constant 0 : i32
    %c0_i32_0 = arith.constant 0 : i32
    return %arg0, %c0_i32 : i32, i32
  }
  func.func @transform_1(%arg0: i32) -> (i32, i32) {
    %c0_i32 = arith.constant 0 : i32
    %c0_i32_0 = arith.constant 0 : i32
    return %arg0, %c0_i32 : i32, i32
  }
}

</mosaic_0001>

<bundles_post_ra>
// kernel: tpu_custom_call.1
= control target key start
LH: loop header
LB: loop body
LE: loop exit
PB: predicated region body
PF: predicated region fallthrough
CT: control target
= control target key end

     0   :  { %6 = vsyncpa [#allocation3], 0  ;;  %s390_s0 = inlined_call_operand.hbm [shape: f32[8,32], index: 0, kind: input, shape index: {}]   ;;  %s391_s1 = inlined_call_operand.hbm [shape: f32[8,64], index: 1, kind: output, shape index: {}]  }
   0x1   :  { %7 = vsyncpa [#allocation4], 0  ;;  %s326_s6 = smov [#allocation2]   ;;  %s278_s10 = scalar_lea.hbm %s390_s0, 128 }
   0x2   :  { %s14_s7 = sshll.u32 %s326_s6, 4  ;;  %p279_p0 = scmp.ne.s32.totalorder %s390_s0, %s278_s10  ;;  %s15_s7 = int_to_ptr.vmem [resolvable:$true] %s14_s7 }
   0x3   :  { %p282_p1 = scmp.lt.u32.totalorder %s278_s10, %s390_s0 }
   0x5   :  { %p284_p2 = pnand %p282_p1, %p279_p0 }
   0x7   :  { %287 = shalt.err (!%p284_p2)
}
   0x8   :  { %s288_s15 = scalar_lea.vmem %s15_s7, 128  ;;  %p293_p4 = scmp.lt.s32.totalorder %s15_s7, %s15_s7 }
   0x9   :  { %p289_p3 = scmp.ne.s32.totalorder %s15_s7, %s288_s15  ;;  %p294_p5 = scmp.lt.s32.totalorder %s288_s15, %s288_s15 }
   0xb   :  { %p295_p6 = por %p294_p5, %p293_p4 }
   0xd   :  { %p296_p7 = pnand %p295_p6, %p289_p3 }
   0xf   :  { %299 = shalt.err (!%p296_p7)
}
  0x10   :  { %17 = dma.hbm_to_vmem [thread:$0]  %s390_s0, 128, %s15_s7, [#allocation3]  }
  0x11   :  { %322 = dma.done.wait [#allocation3], 128  }
  0x12   :  { %323 = vsyncadd [#allocation3], 4294967168  ;;  %v21_v0 = vld [vmem:[#allocation2] sm:$0xff]  ;;  %v327_v13 = vmov 683565275   ;;  %s333_s0 = smov 32  }
  0x13   :  { %v357_v1 = vmul.f32 6.2831855, %v21_v0  ;;  %v328_v15 = vmov 2475754826   ;;  %v329_v17 = vmov 2131351028  }
  0x14   :  { %v330_v19 = vmov 2102212464   ;;  %v331_v21 = vmov 920167782   ;;  %v332_v28 = vmov 1326507024  }
  0x15   :  { %v26_v2 = vand.u32 2139095040, %v357_v1  ;;  %v23_v4 = vand.u32 2147483647, %v357_v1  ;;  %vm25_vm7 = vcmp.lt.s32.totalorder %v357_v1, 0  ;;  %vm115_vm15 = vweird.f32 %v357_v1  ;;  %s334_s18 = smov [#allocation5]  }
  0x16   :  { %s244_s19 = sshll.u32 %s334_s18, 4  ;;  %s245_s19 = int_to_ptr.vmem [resolvable:$true] %s244_s19 }
  0x17   :  { %v27_v3 = vshrl.u32 %v26_v2, 23  ;;  %v30_v7 = vand.u32 8388607, %v23_v4  ;;  %vm24_vm8 = vcmp.le.f32.partialorder %v23_v4, 0.7853982  ;;  %s300_s20 = scalar_lea.vmem %s245_s19, 128  ;;  %p305_p9 = scmp.lt.s32.totalorder %s245_s19, %s245_s19 }
  0x18   :  { %p301_p8 = scmp.ne.s32.totalorder %s245_s19, %s300_s20  ;;  %p306_p10 = scmp.lt.s32.totalorder %s300_s20, %s300_s20 }
  0x19   :  { %v253_v5 = vadd.s32 4294967169, %v27_v3  ;;  %v31_v10 = vor.u32 8388608, %v30_v7 }
  0x1a   :  { %p307_p11 = por %p306_p10, %p305_p9 }
  0x1b   :  { %v33_v6 = vadd.s32 1, %v253_v5  ;;  %v71_v30 = vshll.u32 %v31_v10, 8 }
  0x1c   :  { %p308_p12 = pnand %p307_p11, %p301_p8 }
  0x1d   :  { %vm34_vm0 = vcmp.gt.s32.totalorder %v33_v6, 0 }
  0x1e   :  { %v35_v8 = vsel %vm34_vm0, %v33_v6, 0  ;;  %vm127_vm0 = vcmask 261120  }
  0x1f   :  { %v37_v9 = vand.u32 31, %v35_v8  ;;  %v36_v11 = vshrl.u32 %v35_v8, 5 }
  0x21   :  { %v38_v12 = vsub.s32 32, %v37_v9  ;;  %v40_v14 = vshll.u32 %v327_v13, %v37_v9  ;;  %v43_v16 = vshll.u32 %v328_v15, %v37_v9  ;;  %v46_v18 = vshll.u32 %v329_v17, %v37_v9 }
  0x22   :  { %v49_v20 = vshll.u32 %v330_v19, %v37_v9  ;;  %v52_v22 = vshll.u32 %v331_v21, %v37_v9  ;;  %vm55_vm1 = vcmp.lt.s32.totalorder %v36_v11, 1  ;;  %vm58_vm2 = vcmp.lt.s32.totalorder %v36_v11, 4 }
  0x23   :  { %v39_v23 = vshrl.u32 %v327_v13, %v38_v12  ;;  %v41_v24 = vshrl.u32 %v328_v15, %v38_v12  ;;  %v44_v25 = vshrl.u32 %v329_v17, %v38_v12  ;;  %v47_v26 = vshrl.u32 %v330_v19, %v38_v12 }
  0x24   :  { %v50_v27 = vshrl.u32 %v331_v21, %v38_v12  ;;  %v53_v29 = vshrl.u32 %v332_v28, %v38_v12  ;;  %vm56_vm3 = vcmp.lt.s32.totalorder %v36_v11, 2  ;;  %vm57_vm4 = vcmp.lt.s32.totalorder %v36_v11, 3 }
  0x25   :  { %v42_v31 = vor.u32 %v41_v24, %v40_v14  ;;  %v45_v32 = vor.u32 %v44_v25, %v43_v16  ;;  %v48_v33 = vor.u32 %v47_v26, %v46_v18 }
  0x26   :  { %v51_v34 = vor.u32 %v50_v27, %v49_v20  ;;  %v54_v35 = vor.u32 %v53_v29, %v52_v22 }
  0x27   :  { %v59_v36 = vsel %vm55_vm1, %v39_v23, %v42_v31  ;;  %v60_v37 = vsel %vm58_vm2, %v48_v33, 2102212464  ;;  %v63_v38 = vsel %vm55_vm1, %v42_v31, %v45_v32  ;;  %v67_v39 = vsel %vm55_vm1, %v45_v32, %v48_v33 }
  0x28   :  { %v61_v40 = vsel %vm57_vm4, %v45_v32, %v60_v37  ;;  %v64_v41 = vsel %vm58_vm2, %v51_v34, 920167782  ;;  %v68_v42 = vsel %vm58_vm2, %v54_v35, 1326507024  ;;  %vm236_vm1 = vcmask 523520  }
  0x29   :  { %v65_v43 = vsel %vm57_vm4, %v48_v33, %v64_v41  ;;  %v69_v44 = vsel %vm57_vm4, %v51_v34, %v68_v42  ;;  %v62_v45 = vsel %vm56_vm3, %v59_v36, %v61_v40 }
  0x2a   :  { %v66_v46 = vsel %vm56_vm3, %v63_v38, %v65_v43  ;;  %v70_v47 = vsel %vm56_vm3, %v67_v39, %v69_v44  ;;  %v78_v52 = vmul.u32 %v71_v30, %v62_v45 }
  0x2b   :  { %v363_v48 = vmul.u32.u64.low %v71_v30, %v70_v47  ;;  %v364_v49 = vmul.u32.u64.high %v71_v30, %v70_v47, %v363_v48  ;;  %v366_v50 = vmul.u32.u64.low %v71_v30, %v66_v46  ;;  %v367_v51 = vmul.u32.u64.high %v71_v30, %v66_v46, %v366_v50 }
  0x2d   :  { %vm80_vm5 = vc.u32 %v364_v49, %v366_v50  ;;  %v81_v53 = vadd.s32 1, %v367_v51  ;;  %v79_v0 = vadd.s32 %v366_v50, %v364_v49 }
  0x2f   :  { %v82_v54 = vsel %vm80_vm5, %v81_v53, %v367_v51 }
  0x30   :  { %v83_v55 = vadd.s32 %v82_v54, %v78_v52 }
  0x32   :  { %v84_v56 = vadd.s32 536870912, %v83_v55 }
  0x34   :  { %v85_v57 = vshrl.u32 %v84_v56, 30 }
  0x36   :  { %v86_v58 = vshll.u32 %v85_v57, 30  ;;  %v109_v15 = vsub.s32 4, %v85_v57 }
  0x38   :  { %v87_v59 = vsub.s32 %v83_v55, %v86_v58  ;;  %v110_v18 = vsel %vm25_vm7, %v109_v15, %v85_v57 }
  0x39   :  { %v112_v20 = vsel %vm24_vm8, 0, %v110_v18 }
  0x3a   :  { %v89_v60 = vsub.s32 0, %v87_v59  ;;  %v116_v21 = vadd.s32 3, %v112_v20  ;;  %v222_v23 = vand.u32 3, %v112_v20 }
  0x3c   :  { %v254_v61 = vmin.u32 %v89_v60, %v87_v59  ;;  %v117_v22 = vand.u32 3, %v116_v21  ;;  %vm227_vm10 = vcmp.eq.s32.totalorder %v222_v23, 2  ;;  %vm224_vm12 = vcmp.eq.s32.totalorder %v222_v23, 0 }
  0x3d   :  { %vm223_vm14 = vcmp.lt.s32.totalorder %v222_v23, 2 }
  0x3e   :  { %v91_v62 = vclz %v254_v61  ;;  %vm122_vm9 = vcmp.eq.s32.totalorder %v117_v22, 2  ;;  %vm119_vm11 = vcmp.eq.s32.totalorder %v117_v22, 0  ;;  %vm118_vm13 = vcmp.lt.s32.totalorder %v117_v22, 2 }
  0x40   :  { %v255_v63 = vadd.s32 4294967294, %v91_v62 }
  0x42   :  { %vm256_vm6 = vcmp.lt.s32.totalorder %v255_v63, 0 }
  0x43   :  { %v94_v2 = vsel %vm256_vm6, 0, %v255_v63 }
  0x44   :  { %v95_v3 = vsub.s32 32, %v94_v2  ;;  %v96_v5 = vshll.u32 %v87_v59, %v94_v2  ;;  %v99_v6 = vsub.s32 4294967266, %v94_v2 }
  0x46   :  { %v97_v7 = vshrl.u32 %v79_v0, %v95_v3  ;;  %v100_v8 = vadd.s32 127, %v99_v6 }
  0x48   :  { %v98_v9 = vor.u32 %v97_v7, %v96_v5  ;;  %v101_v10 = vshll.u32 %v100_v8, 23 }
  0x4a   :  { %v102_v11 = vor.u32 4788187, %v101_v10  ;;  %v105_v12 = vcvt.s32.f32 %v98_v9 }
  0x4c   :  { %v103_v13 = vand.u32 2147483647, %v102_v11 }
  0x4e   :  { %v106_v14 = vmul.f32 %v105_v12, %v103_v13 }
  0x50   :  { %v107_v16 = vxor.u32 2147483648, %v106_v14 }
  0x52   :  { %v108_v17 = vsel %vm25_vm7, %v107_v16, %v106_v14 }
  0x53   :  { %v111_v19 = vsel %vm24_vm8, %v357_v1, %v108_v17 }
  0x54   :  { %274 = vcosq.f32 %v111_v19 }
  0x55   :  { %276 = vsinq.f32 %v111_v19 }
  0x5e   :  { %v275_v24 = vpop.eup %274 }
  0x5f   :  { %v277_v25 = vpop.eup %276  ;;  %v123_v26 = vxor.u32 2147483648, %v275_v24 }
  0x60   :  { %v120_v4 = vxor.u32 2147483648, %v277_v25 }
  0x61   :  { %v124_v27 = vsel %vm122_vm9, %v123_v26, %v277_v25  ;;  %v229_v28 = vsel %vm227_vm10, %v123_v26, %v277_v25 }
  0x62   :  { %v121_v29 = vsel %vm119_vm11, %v275_v24, %v120_v4  ;;  %v226_v30 = vsel %vm224_vm12, %v275_v24, %v120_v4 }
  0x63   :  { %v125_v31 = vsel %vm118_vm13, %v121_v29, %v124_v27  ;;  %v230_v32 = vsel %vm223_vm14, %v226_v30, %v229_v28 }
  0x64   :  { %v126_v33 = vsel %vm115_vm15, nan, %v125_v31  ;;  %v231_v34 = vsel %vm115_vm15, nan, %v230_v32 }
  0x65   :  { %128 = vst.msk [vmem:[#allocation5] sm:$0xff] %vm127_vm0, %v126_v33  ;;  %233 = vrot.lane.b32.xlu0 %v231_v34, %s333_s0 }
  0xd7   :  { %v234_v35 = vpop.permute.xlu0 %233 }
  0xd8   :  { %237 = vst.msk [vmem:[#allocation5] sm:$0xff] %vm236_vm1, %v234_v35 }
  0xd9   :  { %311 = shalt.err (!%p308_p12)
}
  0xda   :  { %s312_s23 = scalar_lea.hbm %s391_s1, 128 }
  0xdb   :  { %p313_p13 = scmp.ne.s32.totalorder %s391_s1, %s312_s23  ;;  %p316_p0 = scmp.lt.u32.totalorder %s312_s23, %s391_s1 }
  0xdd   :  { %p318_p1 = pnand %p316_p0, %p313_p13 }
  0xdf   :  { %321 = shalt.err (!%p318_p1)
}
  0xe0   :  { %247 = dma.vmem_to_hbm [thread:$0]  %s245_s19, 128, %s391_s1, [#allocation4]  }
  0xe1   :  { %324 = dma.done.wait [#allocation4], 128  }
  0xe2   :  { %325 = vsyncadd [#allocation4], 4294967168 }
  0xe3   :  { %251 = vsyncpa [#allocation3], 1 }
  0xe4   :  { %252 = vsyncpa [#allocation4], 1 }

</bundles_post_ra>
